<compile_context>
chip_gen: v7x
topology: tpu7x:2x2x1
jax: 0.10.0
libtpu: 0.0.40
codegen_flags: <defaults>
</compile_context>

<pallas_src>
import math

import jax
import jax.numpy as jnp
from jax.experimental import pallas as pl
from jax.experimental.pallas import tpu as pltpu

_TARGET_TILE_BYTES = 8 << 20   # ~8 MiB per block buffer
_VMEM_LIMIT_BYTES = 48 << 20   # 4 buffers x 8 MiB + scratch; safe on v5e/v6e/v7x


def _gate_kernel(thr_ref, x_ref, o_ref):
    """out = where(x < thr, 0.1 * x, x) on one VMEM tile."""
    x = x_ref[...]
    thr = thr_ref[0, 0].astype(x.dtype)
    o_ref[...] = jnp.where(x < thr, x * jnp.asarray(0.1, x.dtype), x)


def _as_2d(mel: jax.Array) -> jax.Array:
    """Copy-free 2D view of the input, preferring a lane-dense last dim."""
    n = math.prod(mel.shape)
    flat = mel.reshape(-1)
    for lane in (1024, 512, 256, 128):
        if n % lane == 0:
            return flat.reshape(n // lane, lane)
    # Misaligned total size: keep the native last dim; Pallas masks the ragged
    # edge block, which is far cheaper than pad+slice (two extra HBM passes).
    if mel.ndim >= 2:
        return mel.reshape(-1, mel.shape[-1])
    return flat.reshape(1, n)


def spectral_noise_gate(mel: jax.Array, threshold=0.1) -> jax.Array:
    """Elementwise spectral noise gate on an arbitrary-shape array."""
    orig_shape = mel.shape
    dtype = mel.dtype

    x2d = _as_2d(mel)
    rows, lane = x2d.shape
    itemsize = jnp.dtype(dtype).itemsize

    # Largest block (multiple of 8 rows) at ~_TARGET_TILE_BYTES per buffer.
    max_block_rows = max(8, (_TARGET_TILE_BYTES // (lane * itemsize)) // 8 * 8)

    if rows <= max_block_rows:
        if rows >= 16:
            # Split into >= 2 blocks so the "parallel" grid axis can be sharded
            # across v7x's two TensorCores (harmless elsewhere).
            half = (rows + 1) // 2
            block_rows = (half + 7) // 8 * 8
        else:
            # Single block equal to the full dims (always a legal block shape).
            block_rows = rows
    else:
        block_rows = max_block_rows

    grid = (pl.cdiv(rows, block_rows),)

    thr = jnp.full((1, 1), threshold, dtype=jnp.float32)

    out2d = pl.pallas_call(
        _gate_kernel,
        out_shape=jax.ShapeDtypeStruct((rows, lane), dtype),
        grid=grid,
        in_specs=[
            pl.BlockSpec(memory_space=pltpu.MemorySpace.SMEM),   # threshold scalar
            pl.BlockSpec((block_rows, lane), lambda i: (i, 0)),  # input tile
        ],
        out_specs=pl.BlockSpec((block_rows, lane), lambda i: (i, 0)),
        compiler_params=pltpu.CompilerParams(
            dimension_semantics=("parallel",),
            vmem_limit_bytes=_VMEM_LIMIT_BYTES,
        ),
    )(thr, x2d)

    return out2d.reshape(orig_shape)


def spectral_noise_gate_ref(mel: jax.Array, threshold: float = 0.1) -> jax.Array:
    """Pure-JAX reference matching the PyTorch forward."""
    return jnp.where(mel < threshold, mel * 0.1, mel)


if __name__ == "__main__":
    threshold = 0.1  # config.get('gate_threshold', 0.1)
    gate = jax.jit(spectral_noise_gate)

    # 1) Small mel spectrogram: batch=2, n_mels=16, frames=128 (lane-dense path).
    mel = jax.random.normal(jax.random.PRNGKey(0), (2, 16, 128), dtype=jnp.float32) * 0.2
    out = jax.block_until_ready(gate(mel, threshold=threshold))
    ref = spectral_noise_gate_ref(mel, threshold)
    assert out.shape == mel.shape and out.dtype == mel.dtype
    assert jnp.allclose(out, ref, atol=1e-6, rtol=1e-6), "mismatch (aligned shape)"

    # 2) Odd shape exercising the native-layout (masked edge block) path.
    mel_odd = jax.random.normal(jax.random.PRNGKey(1), (3, 13, 50), dtype=jnp.float32) * 0.2
    out_odd = jax.block_until_ready(gate(mel_odd, threshold=threshold))
    ref_odd = spectral_noise_gate_ref(mel_odd, threshold)
    assert out_odd.shape == mel_odd.shape and out_odd.dtype == mel_odd.dtype
    assert jnp.allclose(out_odd, ref_odd, atol=1e-6, rtol=1e-6), "mismatch (odd shape)"

    # 3) Shape exercising the >=2-grid-step split path (80 lane-dense rows -> 2 tiles).
    mel_big = jax.random.normal(jax.random.PRNGKey(2), (2, 80, 512), dtype=jnp.float32) * 0.2
    out_big = jax.block_until_ready(gate(mel_big, threshold=threshold))
    ref_big = spectral_noise_gate_ref(mel_big, threshold)
    assert jnp.allclose(out_big, ref_big, atol=1e-6, rtol=1e-6), "mismatch (multi-tile)"

    print("KERNEL_OK")
</pallas_src>

<mosaic_0001>
module attributes {stable_mosaic.version = 11 : i64} {
  func.func @_gate_kernel(%arg0: i32, %arg1: memref<1x1xf32, #tpu.memory_space<smem>>, %arg2: memref<4x1024xf32, #tpu.memory_space<vmem>>, %arg3: memref<4x1024xf32, #tpu.memory_space<vmem>>) attributes {dimension_semantics = [#tpu.dimension_semantics<parallel>], iteration_bounds = array<i64: 1>, scalar_prefetch = 0 : i64, scratch_operands = 0 : i64, tpu.core_type = #tpu.core_type<tc>, window_params = [{transform_indices = @transform_0, window_bounds = array<i64: 1, 1>}, {transform_indices = @transform_1, window_bounds = array<i64: 4, 1024>}, {transform_indices = @transform_2, window_bounds = array<i64: 4, 1024>}]} {
    %c0 = arith.constant 0 : index
    %c0_0 = arith.constant 0 : index
    %0 = vector.load %arg2[%c0, %c0_0] : memref<4x1024xf32, #tpu.memory_space<vmem>>, vector<4x1024xf32>
    %c0_1 = arith.constant 0 : index
    %c0_2 = arith.constant 0 : index
    %1 = memref.load %arg1[%c0_1, %c0_2] : memref<1x1xf32, #tpu.memory_space<smem>>
    %2 = vector.broadcast %1 : f32 to vector<4x1024xf32>
    %3 = arith.cmpf olt, %0, %2 : vector<4x1024xf32>
    %cst = arith.constant 1.000000e-01 : f32
    %4 = vector.broadcast %cst : f32 to vector<4x1024xf32>
    %5 = arith.mulf %0, %4 : vector<4x1024xf32>
    %6 = arith.select %3, %5, %0 : vector<4x1024xi1>, vector<4x1024xf32>
    %c0_3 = arith.constant 0 : index
    %c0_4 = arith.constant 0 : index
    %7 = vector.load %arg3[%c0_3, %c0_4] : memref<4x1024xf32, #tpu.memory_space<vmem>>, vector<4x1024xf32>
    tpu.vector_store %arg3[%c0_3, %c0_4], %6 {strides = array<i32>} : memref<4x1024xf32, #tpu.memory_space<vmem>>, vector<4x1024xf32>,
    return
  }
  func.func @transform_0(%arg0: i32) -> (i32, i32) {
    %c0_i32 = arith.constant 0 : i32
    %c0_i32_0 = arith.constant 0 : i32
    %c0_i32_1 = arith.constant 0 : i32
    return %c0_i32, %c0_i32_0 : i32, i32
  }
  func.func @transform_1(%arg0: i32) -> (i32, i32) {
    %c0_i32 = arith.constant 0 : i32
    %c0_i32_0 = arith.constant 0 : i32
    return %arg0, %c0_i32 : i32, i32
  }
  func.func @transform_2(%arg0: i32) -> (i32, i32) {
    %c0_i32 = arith.constant 0 : i32
    %c0_i32_0 = arith.constant 0 : i32
    return %arg0, %c0_i32 : i32, i32
  }
}

</mosaic_0001>

<bundles_post_ra>
// kernel: spectral_noise_gate.1
= control target key start
LH: loop header
LB: loop body
LE: loop exit
PB: predicated region body
PF: predicated region fallthrough
CT: control target
= control target key end

     0   :  { %s80_s0 = inlined_call_operand.<no memory space> [shape: f32[1,1], index: 0, kind: input, shape index: {}]   ;;  %s81_s1 = inlined_call_operand.vmem [shape: f32[4,1024], index: 1, kind: input, shape index: {}]   ;;  %s82_s2 = inlined_call_operand.vmem [shape: f32[4,1024], index: 2, kind: output, shape index: {}]  }
   0x1   :  { %v12_v0 = vld [vmem:[%s81_s1] sm:$0xff]  ;;  %v17_v1 = vstv %s80_s0  ;;  %v13_v2 = vld [vmem:[%s81_s1 + $0x8] sm:$0xff]  ;;  %v14_v3 = vld [vmem:[%s81_s1 + $0x10] sm:$0xff] }
   0x2   :  { %vm18_vm0 = vcmp.lt.f32.partialorder %v12_v0, %v17_v1  ;;  %v22_v4 = vmul.f32 0.1, %v12_v0  ;;  %vm19_vm1 = vcmp.lt.f32.partialorder %v13_v2, %v17_v1  ;;  %v23_v5 = vmul.f32 0.1, %v13_v2  ;;  %v15_v6 = vld [vmem:[%s81_s1 + $0x18] sm:$0xff] }
   0x3   :  { %vm20_vm2 = vcmp.lt.f32.partialorder %v14_v3, %v17_v1  ;;  %v24_v7 = vmul.f32 0.1, %v14_v3  ;;  %vm21_vm3 = vcmp.lt.f32.partialorder %v15_v6, %v17_v1  ;;  %v25_v8 = vmul.f32 0.1, %v15_v6 }
   0x4   :  { %v26_v9 = vsel %vm18_vm0, %v22_v4, %v12_v0  ;;  %v27_v10 = vsel %vm19_vm1, %v23_v5, %v13_v2 }
   0x5   :  { %30 = vst [vmem:[%s82_s2] sm:$0xff] %v26_v9  ;;  %31 = vst [vmem:[%s82_s2 + $0x8] sm:$0xff] %v27_v10  ;;  %v28_v11 = vsel %vm20_vm2, %v24_v7, %v14_v3  ;;  %v29_v12 = vsel %vm21_vm3, %v25_v8, %v15_v6 }
   0x6   :  { %32 = vst [vmem:[%s82_s2 + $0x10] sm:$0xff] %v28_v11  ;;  %33 = vst [vmem:[%s82_s2 + $0x18] sm:$0xff] %v29_v12 }

</bundles_post_ra>
